<compile_context>
chip_gen: v7x
topology: tpu7x:2x2x1
jax: 0.10.0
libtpu: 0.0.40
codegen_flags: <defaults>
</compile_context>

<pallas_src>
import numpy as np
import jax
import jax.numpy as jnp
from jax.experimental import pallas as pl
from jax.experimental.pallas import tpu as pltpu

_VMEM_LIMIT = 48 * 1024 * 1024


# --------------------------------------------------------------------------
# Host-side permutation (the Python/NumPy shuffle loop of the torch module).
# --------------------------------------------------------------------------
def _build_permutation(n, ptr, seed):
    # TODO(synk): the torch module uses the *global* NumPy RNG state; we use a
    # seeded Generator by default for reproducibility (pass seed=None to use
    # the global RNG like torch does).
    if ptr is None:
        ptr_list = [0, n]
    else:
        ptr_list = [int(v) for v in np.asarray(ptr).reshape(-1).tolist()]
    rng = np.random if seed is None else np.random.default_rng(seed)
    perm = np.arange(n, dtype=np.int32)  # rows outside the ptr range stay identity
    tracker = ptr_list[0]
    for p in ptr_list[1:]:
        seg = np.arange(tracker, p)
        rng.shuffle(seg)
        perm[tracker:p] = seg
        tracker = p
    return perm


# --------------------------------------------------------------------------
# Tile-size helpers.
# --------------------------------------------------------------------------
def _choose_row_tile(n_rows, tn, itemsize, target_bytes):
    """Row tile: multiple of 8 (or the full row count when < 8), sized to
    ~target_bytes per block, and capped so there are >= 2 row tiles (lets the
    two v7x TensorCores split the parallel axis)."""
    if n_rows < 8:
        return n_rows
    tm = max(1, target_bytes // max(1, tn * itemsize))
    tm = max(8, (tm // 8) * 8)
    if n_rows > 8:
        half = ((((n_rows + 1) // 2) + 7) // 8) * 8
        tm = min(tm, max(8, half))
    tm = min(tm, (n_rows // 8) * 8)
    return max(8, tm)


# --------------------------------------------------------------------------
# Path 1: XLA gather + aliased Pallas blend (narrow rows / fallback).
# --------------------------------------------------------------------------
def _mixup_blend(x, perm, lam_f, oml_f):
    N, D = x.shape
    itemsize = x.dtype.itemsize

    # Lane-dense column tile: multiple of 128, or the whole feature dim.
    tn = min(D, 2048) if D % 128 == 0 else D
    tm = _choose_row_tile(N, tn, itemsize, target_bytes=4 << 20)
    grid = (pl.cdiv(N, tm), pl.cdiv(D, tn))

    def kernel(x_ref, xg_ref, o_ref):
        a = x_ref[...].astype(jnp.float32)
        b = xg_ref[...].astype(jnp.float32)
        o_ref[...] = (a * lam_f + b * oml_f).astype(o_ref.dtype)

    call = pl.pallas_call(
        kernel,
        out_shape=jax.ShapeDtypeStruct((N, D), x.dtype),
        grid=grid,
        in_specs=[pl.BlockSpec((tm, tn), lambda i, j: (i, j)),
                  pl.BlockSpec((tm, tn), lambda i, j: (i, j))],
        out_specs=pl.BlockSpec((tm, tn), lambda i, j: (i, j)),
        # Gathered operand shares its HBM buffer with the output.
        input_output_aliases={1: 0},
        compiler_params=pltpu.CompilerParams(
            dimension_semantics=("parallel", "parallel"),
            vmem_limit_bytes=_VMEM_LIMIT),
        cost_estimate=pl.CostEstimate(
            flops=3 * N * D, transcendentals=0,
            bytes_accessed=3 * N * D * itemsize),
    )

    @jax.jit
    def run(xx, pp):
        xg = jnp.take(xx, pp, axis=0)     # bulk XLA gather (narrow-row case)
        return call(xx, xg)               # xg aliased -> out, no extra buffer

    return run(x, perm)


# --------------------------------------------------------------------------
# Path 2: fused gather — permuted rows DMA'd straight from HBM (wide rows).
# --------------------------------------------------------------------------
def _mixup_fused(x, perm, lam_f, oml_f):
    N, D = x.shape
    itemsize = x.dtype.itemsize
    row_bytes = D * itemsize

    # Rows per tile: ~1 MiB of gathered rows, capped at 256 outstanding
    # row-DMAs, multiple of 8, and >= 2 grid steps so the manual prefetch
    # actually overlaps with compute/writeback.
    tm = min(256, ((1 << 20) // row_bytes) // 8 * 8)
    half = ((((N + 1) // 2) + 7) // 8) * 8
    tm = min(tm, half, (N // 8) * 8)
    tm = max(8, tm)
    grid = (pl.cdiv(N, tm),)

    def kernel(perm_ref, x_ref, xh_ref, o_ref, gbuf, sem):
        # perm_ref: SMEM (N,) int32 (scalar-prefetched)
        # x_ref  : VMEM (tm, D) identity tile (auto-pipelined)
        # xh_ref : HBM  (N, D)  full array (gather source)
        # gbuf   : VMEM (2, tm, D) double-buffered gather scratch
        # sem    : DMA semaphores (2,), one per slot
        i = pl.program_id(0)
        nsteps = pl.num_programs(0)
        slot = i % 2

        def issue(step, slot_):
            base = step * tm

            def body(r, c):
                row = jnp.minimum(base + r, N - 1)   # clamp padding rows
                pltpu.make_async_copy(
                    xh_ref.at[pl.ds(perm_ref[row], 1)],
                    gbuf.at[slot_, pl.ds(r, 1)],
                    sem.at[slot_],
                ).start()
                return c

            jax.lax.fori_loop(0, tm, body, 0)

        # Prologue: gather rows for the first tile.
        @pl.when(i == 0)
        def _():
            issue(0, 0)

        # Wait for this tile's gathered rows (equivalent-descriptor waits;
        # all row copies have identical size).
        def drain(r, c):
            pltpu.make_async_copy(
                xh_ref.at[pl.ds(0, 1)],
                gbuf.at[slot, pl.ds(0, 1)],
                sem.at[slot],
            ).wait()
            return c

        jax.lax.fori_loop(0, tm, drain, 0)

        # Prefetch next tile's rows into the other slot (overlaps with the
        # blend below and with the auto-pipeline's own DMAs).
        @pl.when(i + 1 < nsteps)
        def _():
            issue(i + 1, 1 - slot)

        a = x_ref[...].astype(jnp.float32)
        b = gbuf[slot].astype(jnp.float32)
        o_ref[...] = (a * lam_f + b * oml_f).astype(o_ref.dtype)

    call = pl.pallas_call(
        kernel,
        out_shape=jax.ShapeDtypeStruct((N, D), x.dtype),
        grid_spec=pltpu.PrefetchScalarGridSpec(
            num_scalar_prefetch=1,
            grid=grid,
            in_specs=[pl.BlockSpec((tm, D), lambda i, p: (i, 0)),
                      pl.BlockSpec(memory_space=pl.ANY)],
            out_specs=pl.BlockSpec((tm, D), lambda i, p: (i, 0)),
            scratch_shapes=[pltpu.VMEM((2, tm, D), x.dtype),
                            pltpu.SemaphoreType.DMA((2,))]),
        compiler_params=pltpu.CompilerParams(
            # Manual prefetch assumes in-order grid steps -> keep "arbitrary".
            dimension_semantics=("arbitrary",),
            vmem_limit_bytes=_VMEM_LIMIT),
        cost_estimate=pl.CostEstimate(
            flops=3 * N * D, transcendentals=0,
            bytes_accessed=3 * N * D * itemsize),
    )

    @jax.jit
    def run(pp, xx):
        return call(pp, xx, xx)

    return run(perm, x)


# --------------------------------------------------------------------------
# Public wrapper (forward pass of the torch MixUp module).
# --------------------------------------------------------------------------
def mixup_pallas(x, lam, ptr=None, *, seed=0):
    """out = lam * x + (1 - lam) * x[perm];  returns (out, perm)."""
    x = jnp.asarray(x)
    if not jnp.issubdtype(x.dtype, jnp.floating):
        # Match torch promotion of (int tensor) * (float scalar) -> float.
        x = x.astype(jnp.float32)
    N, D = x.shape

    perm = jnp.asarray(_build_permutation(N, ptr, seed), dtype=jnp.int32)

    lam_f = float(lam)            # compile-time constants (no SMEM operand)
    oml_f = 1.0 - lam_f

    itemsize = x.dtype.itemsize
    row_bytes = D * itemsize
    use_fused = (N >= 16
                 and row_bytes >= 1024            # wide enough for per-row DMA
                 and row_bytes <= (512 << 10)     # fused VMEM footprint bound
                 and N * 4 <= (256 << 10))        # perm fits comfortably in SMEM

    if use_fused:
        out = _mixup_fused(x, perm, lam_f, oml_f)
    else:
        out = _mixup_blend(x, perm, lam_f, oml_f)
    return out, perm


# --------------------------------------------------------------------------
# Self-test.
# --------------------------------------------------------------------------
if __name__ == "__main__":
    def _check(x, lam, ptr, seed):
        out, perm = mixup_pallas(x, lam, ptr=ptr, seed=seed)
        out = jax.block_until_ready(out)
        ref = x * lam + (1.0 - lam) * x[perm]
        np.testing.assert_allclose(np.asarray(out), np.asarray(ref),
                                   rtol=1e-6, atol=1e-6)

    key = jax.random.PRNGKey(0)

    # 1) Narrow rows + segment ptr -> XLA-gather blend path (aliased output).
    x1 = jax.random.normal(key, (8, 32), dtype=jnp.float32)
    _check(x1, 0.7, jnp.asarray([0, 4, 8], dtype=jnp.int32), seed=1)

    # 2) Narrow 128-wide rows, N not a multiple of the row tile -> blend path
    #    with a partial edge block.
    x2 = jax.random.normal(jax.random.PRNGKey(2), (12, 128), dtype=jnp.float32)
    _check(x2, 0.25, None, seed=3)

    # 3) Wide rows, whole-batch shuffle -> fused manual-DMA gather path.
    x3 = jax.random.normal(jax.random.PRNGKey(1), (64, 256), dtype=jnp.float32)
    _check(x3, 0.3, None, seed=0)

    # 4) Wide rows, D not a multiple of 128, ragged N (partial last tile,
    #    clamped gather rows) and segment ptr -> fused path edge cases.
    x4 = jax.random.normal(jax.random.PRNGKey(4), (50, 320), dtype=jnp.float32)
    _check(x4, 0.6, jnp.asarray([0, 20, 50], dtype=jnp.int32), seed=7)

    print("KERNEL_OK")
</pallas_src>

<mosaic_0001>
module attributes {stable_mosaic.version = 11 : i64} {
  func.func @kernel(%arg0: i32, %arg1: i32, %arg2: memref<8x32xf32, #tpu.memory_space<vmem>>, %arg3: memref<8x32xf32, #tpu.memory_space<vmem>>, %arg4: memref<8x32xf32, #tpu.memory_space<vmem>>) attributes {dimension_semantics = [#tpu.dimension_semantics<parallel>, #tpu.dimension_semantics<parallel>], iteration_bounds = array<i64: 1, 1>, scalar_prefetch = 0 : i64, scratch_operands = 0 : i64, tpu.core_type = #tpu.core_type<tc>, window_params = [{transform_indices = @transform_0, window_bounds = array<i64: 8, 32>}, {transform_indices = @transform_1, window_bounds = array<i64: 8, 32>}, {transform_indices = @transform_2, window_bounds = array<i64: 8, 32>}]} {
    %c0 = arith.constant 0 : index
    %c0_0 = arith.constant 0 : index
    %0 = vector.load %arg2[%c0, %c0_0] : memref<8x32xf32, #tpu.memory_space<vmem>>, vector<8x32xf32>
    %c0_1 = arith.constant 0 : index
    %c0_2 = arith.constant 0 : index
    %1 = vector.load %arg3[%c0_1, %c0_2] : memref<8x32xf32, #tpu.memory_space<vmem>>, vector<8x32xf32>
    %cst = arith.constant 0.699999988 : f32
    %2 = vector.broadcast %cst : f32 to vector<8x32xf32>
    %3 = arith.mulf %0, %2 : vector<8x32xf32>
    %cst_3 = arith.constant 3.000000e-01 : f32
    %4 = vector.broadcast %cst_3 : f32 to vector<8x32xf32>
    %5 = arith.mulf %1, %4 : vector<8x32xf32>
    %6 = arith.addf %3, %5 : vector<8x32xf32>
    %c0_4 = arith.constant 0 : index
    %c0_5 = arith.constant 0 : index
    %7 = vector.load %arg4[%c0_4, %c0_5] : memref<8x32xf32, #tpu.memory_space<vmem>>, vector<8x32xf32>
    tpu.vector_store %arg4[%c0_4, %c0_5], %6 {strides = array<i32>} : memref<8x32xf32, #tpu.memory_space<vmem>>, vector<8x32xf32>,
    return
  }
  func.func @transform_0(%arg0: i32, %arg1: i32) -> (i32, i32) {
    %c0_i32 = arith.constant 0 : i32
    return %arg0, %arg1 : i32, i32
  }
  func.func @transform_1(%arg0: i32, %arg1: i32) -> (i32, i32) {
    %c0_i32 = arith.constant 0 : i32
    return %arg0, %arg1 : i32, i32
  }
  func.func @transform_2(%arg0: i32, %arg1: i32) -> (i32, i32) {
    %c0_i32 = arith.constant 0 : i32
    return %arg0, %arg1 : i32, i32
  }
}

</mosaic_0001>

<bundles_post_ra>
// kernel: run.1
= control target key start
LH: loop header
LB: loop body
LE: loop exit
PB: predicated region body
PF: predicated region fallthrough
CT: control target
= control target key end

     0   :  { %7 = vsyncpa [#allocation3], 0  ;;  %s140_s0 = inlined_call_operand.vmem [shape: f32[8,32], index: 0, kind: input, shape index: {}]   ;;  %s141_s1 = inlined_call_operand.hbm [shape: f32[8,32], index: 1, kind: input, shape index: {}, may-alias: {1,2}]   ;;  %s142_s2 = inlined_call_operand.hbm [shape: f32[8,32], index: 2, kind: output, shape index: {}, may-alias: {1,2}]  }
   0x1   :  { %8 = vsyncpa [#allocation4], 0  ;;  %s96_s9 = smov [#allocation2]   ;;  %s48_s13 = scalar_lea.hbm %s141_s1, 128 }
   0x2   :  { %s17_s10 = sshll.u32 %s96_s9, 4  ;;  %p49_p0 = scmp.ne.s32.totalorder %s141_s1, %s48_s13  ;;  %s18_s10 = int_to_ptr.vmem [resolvable:$true] %s17_s10 }
   0x3   :  { %p52_p1 = scmp.lt.u32.totalorder %s48_s13, %s141_s1 }
   0x5   :  { %p54_p2 = pnand %p52_p1, %p49_p0 }
   0x7   :  { %57 = shalt.err (!%p54_p2)
}
   0x8   :  { %s58_s18 = scalar_lea.vmem %s18_s10, 128  ;;  %p63_p4 = scmp.lt.s32.totalorder %s18_s10, %s18_s10 }
   0x9   :  { %p59_p3 = scmp.ne.s32.totalorder %s18_s10, %s58_s18  ;;  %p64_p5 = scmp.lt.s32.totalorder %s58_s18, %s58_s18 }
   0xb   :  { %p65_p6 = por %p64_p5, %p63_p4 }
   0xd   :  { %p66_p7 = pnand %p65_p6, %p59_p3 }
   0xf   :  { %69 = shalt.err (!%p66_p7)
}
  0x10   :  { %20 = dma.hbm_to_vmem [thread:$0]  %s141_s1, 128, %s18_s10, [#allocation3]  }
  0x11   :  { %92 = dma.done.wait [#allocation3], 128  }
  0x12   :  { %93 = vsyncadd [#allocation3], 4294967168  ;;  %v24_v0 = vld [vmem:[%s140_s0] sm:$0xff]  ;;  %s97_s23 = smov [#allocation5]   ;;  %vm29_vm0 = vcmask 261120  }
  0x13   :  { %v25_v1 = vld [vmem:[#allocation2] sm:$0xff]  ;;  %s37_s24 = sshll.u32 %s97_s23, 4  ;;  %v26_v2 = vmul.f32 0.7, %v24_v0  ;;  %s38_s24 = int_to_ptr.vmem [resolvable:$true] %s37_s24 }
  0x14   :  { %v27_v3 = vmul.f32 0.3, %v25_v1  ;;  %s70_s25 = scalar_lea.vmem %s38_s24, 128  ;;  %p75_p9 = scmp.lt.s32.totalorder %s38_s24, %s38_s24 }
  0x15   :  { %p71_p8 = scmp.ne.s32.totalorder %s38_s24, %s70_s25  ;;  %p76_p10 = scmp.lt.s32.totalorder %s70_s25, %s70_s25 }
  0x16   :  { %v28_v4 = vadd.f32 %v27_v3, %v26_v2 }
  0x17   :  { %p77_p11 = por %p76_p10, %p75_p9 }
  0x18   :  { %30 = vst.msk [vmem:[#allocation5] sm:$0xff] %vm29_vm0, %v28_v4 }
  0x19   :  { %p78_p12 = pnand %p77_p11, %p71_p8 }
  0x1b   :  { %81 = shalt.err (!%p78_p12)
}
  0x1c   :  { %s82_s0 = scalar_lea.hbm %s142_s2, 128 }
  0x1d   :  { %p83_p13 = scmp.ne.s32.totalorder %s142_s2, %s82_s0  ;;  %p86_p0 = scmp.lt.u32.totalorder %s82_s0, %s142_s2 }
  0x1f   :  { %p88_p1 = pnand %p86_p0, %p83_p13 }
  0x21   :  { %91 = shalt.err (!%p88_p1)
}
  0x22   :  { %40 = dma.vmem_to_hbm [thread:$0]  %s38_s24, 128, %s142_s2, [#allocation4]  }
  0x23   :  { %94 = dma.done.wait [#allocation4], 128  }
  0x24   :  { %95 = vsyncadd [#allocation4], 4294967168 }
  0x25   :  { %44 = vsyncpa [#allocation3], 1 }
  0x26   :  { %45 = vsyncpa [#allocation4], 1 }

</bundles_post_ra>
